<compile_context>
chip_gen: v5e
topology: v5e:2x2
jax: 0.10.0
libtpu: 0.0.40
codegen_flags: <defaults>
</compile_context>

<pallas_src>
import functools

import jax
import jax.numpy as jnp
from jax import lax
from jax.experimental import pallas as pl
from jax.experimental.pallas import tpu as pltpu


def _round_up(x, m):
    return (x + m - 1) // m * m


def _vmem_capacity_bytes():
    try:
        cap = int(pltpu.get_tpu_info().vmem_capacity_bytes)
        if cap > 0:
            return cap
    except Exception:
        pass
    return 64 * 1024 * 1024          # conservative fallback (v7x per-core VMEM)


# ----------------------------------------------------------------------------
# Kernel 1: point / normal preprocessing (only for the returned points/normals;
# the DPSR kernel below re-derives them in-kernel from the raw packed slab).
# ----------------------------------------------------------------------------
def _prep_kernel(x_ref, pts_ref, nrm_ref):
    x = x_ref[...]                                   # (6, TM)
    p = x[:3]
    n = x[3:]
    pts_ref[...] = jax.nn.sigmoid(p)                 # EUP logistic
    # normals / ||normals||  (no epsilon, like the torch reference)
    nrm_ref[...] = n * lax.rsqrt(jnp.sum(n * n, axis=0, keepdims=True))


def preprocess_points_normals(inputs):
    """inputs: (B, N, 6) -> (points_cm, normals_cm), each (3, B*N) channel-major."""
    B, N, C = inputs.shape
    assert C == 6
    M = B * N
    x = inputs.reshape(M, 6).T                       # (6, M) lane-dense
    TM = min(_round_up(M, 128), 32768)               # lanes per pipelined step
    Mp = _round_up(M, TM)
    if Mp != M:
        # pad with 1.0 so padded normals stay finite (padding is sliced off)
        x = jnp.pad(x, ((0, 0), (0, Mp - M)), constant_values=1.0)

    pts, nrm = pl.pallas_call(
        _prep_kernel,
        out_shape=(jax.ShapeDtypeStruct((3, Mp), jnp.float32),
                   jax.ShapeDtypeStruct((3, Mp), jnp.float32)),
        grid=(Mp // TM,),
        in_specs=[pl.BlockSpec((6, TM), lambda i: (0, i))],
        out_specs=(pl.BlockSpec((3, TM), lambda i: (0, i)),
                   pl.BlockSpec((3, TM), lambda i: (0, i))),
        compiler_params=pltpu.CompilerParams(
            dimension_semantics=("parallel",)),
    )(x)
    return pts[:, :M], nrm[:, :M]


# ----------------------------------------------------------------------------
# Kernel 2: tiled DPSR placeholder (Gaussian oriented-splat field), lane-dense
# ----------------------------------------------------------------------------
TJ_INNER = 128        # point sub-chunk streamed per inner loop iteration
MAX_TJ = 2048         # outer point chunk (grid axis 1)
MAX_TG = 2048         # grid cells per tile (lanes, grid axis 0)


def _dpsr_kernel(inv2sig2, tj_inner, gc_ref, pncm_ref, pnpm_ref, out_ref, nc_ref):
    """Accumulates the oriented-splat field over point chunks.

    gc_ref   : (3, TG)  grid-cell centres, channel-major (cells on lanes)
    pncm_ref : (8, TJ)  raw packed points, channel-major
               rows = [px, py, pz, nx, ny, nz, valid, 0]
    pnpm_ref : (TJ, 8)  same data point-major (points on sublanes)
    out_ref  : (1, TG)  field, revisited (accumulated) across the j grid axis
    nc_ref   : (8, TJ)  scratch holding the MXU LHS [nx, ny, nz, -p.n, 0...]
    """
    j = pl.program_id(1)

    @pl.when(j == 0)
    def _():
        out_ref[...] = jnp.zeros_like(out_ref)

    # ---- fused point preprocessing (channel-major) ----
    pn = pncm_ref[...]                                # (8, TJ)
    p_cm = jax.nn.sigmoid(pn[0:3])
    n_raw = pn[3:6]
    n_cm = n_raw * lax.rsqrt(jnp.sum(n_raw * n_raw, axis=0, keepdims=True))
    valid = pn[6:7]                                   # 0 on padded points
    c = jnp.sum(p_cm * n_cm, axis=0, keepdims=True)   # p . n  (1, TJ)
    nc_ref[...] = jnp.zeros_like(nc_ref)
    nc_ref[0:3, :] = n_cm * valid
    nc_ref[3:4, :] = -c * valid

    gx = gc_ref[0:1, :]                               # (1, TG) lane-dense rows
    gy = gc_ref[1:2, :]
    gz = gc_ref[2:3, :]
    tg = gc_ref.shape[1]
    nsub = pncm_ref.shape[1] // tj_inner

    def body(s, acc):
        j0 = pl.multiple_of(s * tj_inner, tj_inner)
        pr = pnpm_ref[pl.ds(j0, tj_inner), :]         # (tj_inner, 8) point-major raw
        px = jax.nn.sigmoid(pr[:, 0:1])               # (tj_inner, 1)
        py = jax.nn.sigmoid(pr[:, 1:2])
        pz = jax.nn.sigmoid(pr[:, 2:3])
        dx = px - gx                                  # (tj_inner, TG)
        dy = py - gy
        dz = pz - gz
        w = jnp.exp((dx * dx + dy * dy + dz * dz) * (-inv2sig2))   # EUP
        nc_s = nc_ref[:, pl.ds(j0, tj_inner)]         # (8, tj_inner)
        # MXU: reduce over points; rows of acc = [sum w*nx, w*ny, w*nz, -w*c, 0..]
        return acc + jnp.dot(nc_s, w,
                             preferred_element_type=jnp.float32,
                             precision=lax.Precision.HIGHEST)

    acc = lax.fori_loop(0, nsub, body, jnp.zeros((8, tg), jnp.float32),
                        unroll=(nsub <= 8))

    # field(g) = g . (sum_j w n_j) - sum_j w (p_j . n_j)
    field = gx * acc[0:1] + gy * acc[1:2] + gz * acc[2:3] + acc[3:4]
    out_ref[...] += field


def dpsr_placeholder(inputs, res, sigma=0.05):
    """Tiled stand-in for DPSR.

    TODO(synk): the real DPSR is an FFT-based Poisson solve whose source is not
    part of the reference; this deterministic Gaussian oriented-splat indicator
    field exercises the downstream kernels without the O(R^3*M) dense blow-up.

    inputs: (B, N, 6) raw points+normals.  Returns (1, R, R, R) float32.
    """
    R = int(res)
    NG = R ** 3
    B, N, C = inputs.shape
    assert C == 6
    M = B * N

    # ---- pack raw points: channel-major (8, Mp) and point-major (Mp, 8) ----
    x6 = inputs.reshape(M, 6).astype(jnp.float32)
    Mp0 = _round_up(M, TJ_INNER)
    TJ = Mp0 if Mp0 <= MAX_TJ else MAX_TJ
    Mp = _round_up(M, TJ)
    x6p = jnp.pad(x6, ((0, Mp - M), (0, 0)), constant_values=1.0)   # finite padding
    valid = jnp.pad(jnp.ones((M, 1), jnp.float32), ((0, Mp - M), (0, 0)))
    pn_pm = jnp.concatenate(
        [x6p, valid, jnp.zeros((Mp, 1), jnp.float32)], axis=1)      # (Mp, 8)
    pn_cm = pn_pm.T                                                  # (8, Mp)

    # ---- grid-cell centres, channel-major (3, NGp) so cells sit on lanes ----
    coords = (jnp.arange(R, dtype=jnp.float32) + 0.5) / R
    gxc, gyc, gzc = jnp.meshgrid(coords, coords, coords, indexing="ij")
    gc = jnp.stack([gxc, gyc, gzc], axis=0).reshape(3, NG)
    TG = min(MAX_TG, _round_up(NG, 128))
    NGp = _round_up(NG, TG)
    if NGp != NG:
        gc = jnp.pad(gc, ((0, 0), (0, NGp - NG)))

    cap = _vmem_capacity_bytes()
    # double-buffered blocks + (TJ_INNER, TG) elementwise temps + acc/nc scratch
    need = 4 * (2 * (3 * TG + 8 * TJ + 128 * TJ + TG)
                + 7 * TJ_INNER * TG + 8 * TG + 8 * TJ)
    vmem_limit = int(min(max(2 * need, 32 * 1024 * 1024), cap * 5 // 8))

    field = pl.pallas_call(
        functools.partial(_dpsr_kernel, 1.0 / (2.0 * sigma * sigma), TJ_INNER),
        out_shape=jax.ShapeDtypeStruct((1, NGp), jnp.float32),
        grid=(NGp // TG, Mp // TJ),                  # reduction (points) axis last
        in_specs=[
            pl.BlockSpec((3, TG), lambda i, j: (0, i)),
            pl.BlockSpec((8, TJ), lambda i, j: (0, j)),
            pl.BlockSpec((TJ, 8), lambda i, j: (j, 0)),
        ],
        out_specs=pl.BlockSpec((1, TG), lambda i, j: (0, i)),
        scratch_shapes=[pltpu.VMEM((8, TJ), jnp.float32)],
        compiler_params=pltpu.CompilerParams(
            dimension_semantics=("parallel", "arbitrary"),
            vmem_limit_bytes=vmem_limit),
    )(gc, pn_cm, pn_pm)
    return field[0, :NG].reshape(1, R, R, R)


# ----------------------------------------------------------------------------
# Kernel 3: tanh(psr) fused with approx_psr_grad (tiled over X, lane-dense)
# ----------------------------------------------------------------------------
def _psr_grad_kernel(R, scale, psr_ref, halo_ref, grid_ref, grad_ref):
    RR = R * R
    g = jnp.tanh(psr_ref[...])                       # (TX, RR)
    grid_ref[...] = g

    # packed halo: row 0 = clamped row (x0-1), row 1 = clamped row (x0+TX)
    halo = halo_ref[...]                              # (8, RR)
    g_prev = jnp.tanh(halo[0:1, :])
    g_next = jnp.tanh(halo[1:2, :])

    # y/z face masks built in-kernel (no extra index input / DMA stream)
    col = lax.broadcasted_iota(jnp.int32, (1, RR), 1)
    y = col // R
    z = col - y * R

    # X neighbours: stitch halo rows onto the tile (sublane axis).
    gp_x = jnp.concatenate([g[1:], g_next], axis=0)
    gm_x = jnp.concatenate([g_prev, g[:-1]], axis=0)
    # Y/Z neighbours: XLU lane rolls + replication fix at the volume faces.
    gp_y = jnp.where(y == R - 1, g, pltpu.roll(g, RR - R, axis=1))
    gm_y = jnp.where(y == 0,     g, pltpu.roll(g, R,      axis=1))
    gp_z = jnp.where(z == R - 1, g, pltpu.roll(g, RR - 1, axis=1))
    gm_z = jnp.where(z == 0,     g, pltpu.roll(g, 1,      axis=1))

    gx = (gp_x - gm_x) * scale
    gy = (gp_y - gm_y) * scale
    gz = (gp_z - gm_z) * scale

    # Matches torch: grad / (grad.norm(dim=3) + 1e-12).
    inv = 1.0 / (jnp.sqrt(gx * gx + gy * gy + gz * gz) + 1e-12)
    grad_ref[0] = gx * inv
    grad_ref[1] = gy * inv
    grad_ref[2] = gz * inv


def _pick_tx(res, budget_bytes):
    """Largest X tile that divides res, keeps >=2 tiles (v7x: 2 TensorCores)
    and whose double-buffered pipeline blocks + ~10 Mosaic (TX, RR) temps fit
    the generation-aware VMEM budget."""
    RR = res * res
    tx_cap = max(8, res // 2)
    best = 8
    for t in range(8, tx_cap + 1, 8):
        if res % t == 0:
            need = 4 * (2 * (5 * t + 8) + 10 * t) * RR
            if need <= budget_bytes:
                best = t
    return best


def tanh_and_psr_grad(psr_raw, res):
    """psr_raw: (1, R, R, R) raw DPSR output.

    Returns:
      psr_grid: (1, 1, R, R, R)  tanh(psr_raw)
      psr_grad: (3, R, R, R)     normalized central-difference gradient,
                                 channel-major (torch layout is (R, R, R, 3)).
    """
    R = int(res)
    assert R >= 8 and R % 8 == 0, "grid_res must be a multiple of 8"
    RR = R * R
    g2 = psr_raw.reshape(R, RR)                      # x on sublanes, (y,z) on lanes

    cap = _vmem_capacity_bytes()
    budget = min(cap // 4, 32 * 1024 * 1024)
    TX = _pick_tx(R, budget)
    n_tiles = R // TX
    scale = float(R) * 0.5                           # (1/2) / delta, delta = 1/res

    # Packed halo: one (8, RR) block per tile holding only the two boundary
    # rows (pre-clamped -> replication padding at the volume faces).
    tids = jnp.arange(n_tiles)
    prev_rows = jnp.clip(tids * TX - 1, 0, R - 1)
    next_rows = jnp.clip((tids + 1) * TX, 0, R - 1)
    halo = jnp.zeros((n_tiles, 8, RR), jnp.float32)
    halo = halo.at[:, 0, :].set(g2[prev_rows])
    halo = halo.at[:, 1, :].set(g2[next_rows])
    halo = halo.reshape(n_tiles * 8, RR)

    need = 4 * (2 * (5 * TX + 8) + 10 * TX) * RR     # blocks + Mosaic temps
    vmem_limit = int(min(max(2 * need, 32 * 1024 * 1024), cap * 5 // 8))

    psr_grid2, grad = pl.pallas_call(
        functools.partial(_psr_grad_kernel, R, scale),
        out_shape=(jax.ShapeDtypeStruct((R, RR), jnp.float32),
                   jax.ShapeDtypeStruct((3, R, RR), jnp.float32)),
        grid=(n_tiles,),
        in_specs=[
            pl.BlockSpec((TX, RR), lambda i: (i, 0)),
            pl.BlockSpec((8, RR), lambda i: (i, 0)),
        ],
        out_specs=(
            pl.BlockSpec((TX, RR), lambda i: (i, 0)),
            pl.BlockSpec((3, TX, RR), lambda i: (0, i, 0)),
        ),
        compiler_params=pltpu.CompilerParams(
            dimension_semantics=("parallel",),
            vmem_limit_bytes=vmem_limit),
    )(g2, halo)

    return psr_grid2.reshape(1, 1, R, R, R), grad.reshape(3, R, R, R)


# ----------------------------------------------------------------------------
# SAP2Image.forward (geometry hot path)
# ----------------------------------------------------------------------------
def sap2image_forward(inputs, grid_res, psr_sigma=0.05):
    B, N, _ = inputs.shape
    # prep kernel only for the returned points/normals; DPSR consumes raw points
    pts_cm, nrm_cm = preprocess_points_normals(inputs)               # Pallas
    psr_raw = dpsr_placeholder(inputs, grid_res, psr_sigma)          # Pallas
    psr_grid, psr_grad = tanh_and_psr_grad(psr_raw, grid_res)        # Pallas
    points = pts_cm.T.reshape(B, N, 3)
    normals = nrm_cm.T.reshape(B, N, 3)
    # TODO(synk): PSR2SurfacePoints / PSR2Mesh (marching cubes), the PyTorch3D
    # soft-silhouette rasterizer and RenderingNetwork are data-dependent mesh
    # extraction / rasterization with no clean Pallas equivalent.
    return {"psr_grid": psr_grid, "psr_grad": psr_grad,
            "points": points, "normals": normals}


# ----------------------------------------------------------------------------
# Plain-JAX references (correctness checks only)
# ----------------------------------------------------------------------------
def approx_psr_grad_ref(psr_grid, res):
    g = psr_grid[0, 0]
    gp = jnp.pad(g, 1, mode="edge")
    grad_x = (gp[2:, :, :] - gp[:-2, :, :]) * res / 2.0
    grad_y = (gp[:, 2:, :] - gp[:, :-2, :]) * res / 2.0
    grad_z = (gp[:, :, 2:] - gp[:, :, :-2]) * res / 2.0
    grad_x = grad_x[:, 1:-1, 1:-1]
    grad_y = grad_y[1:-1, :, 1:-1]
    grad_z = grad_z[1:-1, 1:-1, :]
    grad = jnp.stack([grad_x, grad_y, grad_z], axis=3)
    return grad / (jnp.linalg.norm(grad, axis=3, keepdims=True) + 1e-12)


def _dpsr_dense_ref(points, normals, res, sigma=0.05):
    coords = (jnp.arange(res, dtype=jnp.float32) + 0.5) / res
    gx, gy, gz = jnp.meshgrid(coords, coords, coords, indexing="ij")
    grid_pts = jnp.stack([gx, gy, gz], axis=-1).reshape(-1, 3)
    p = points.reshape(-1, 3)
    n = normals.reshape(-1, 3)
    diff = grid_pts[:, None, :] - p[None, :, :]
    w = jnp.exp(-jnp.sum(diff * diff, axis=-1) / (2.0 * sigma ** 2))
    field = jnp.sum(w * jnp.sum(diff * n[None], axis=-1), axis=1)
    return field.reshape(1, res, res, res).astype(jnp.float32)


if __name__ == "__main__":
    key = jax.random.PRNGKey(0)
    B, N, R = 1, 256, 16                  # 1 batch, 256 oriented points, 16^3 grid
    inputs = jax.random.normal(key, (B, N, 6), dtype=jnp.float32)

    out = sap2image_forward(inputs, grid_res=R)
    out = jax.tree_util.tree_map(jax.block_until_ready, out)

    # kernel 1 vs plain-JAX reference
    ref_pts = jax.nn.sigmoid(inputs[..., :3])
    ref_nrm = inputs[..., 3:] / jnp.linalg.norm(inputs[..., 3:], axis=-1,
                                                keepdims=True)
    assert jnp.allclose(out["points"], ref_pts, atol=1e-5, rtol=1e-5)
    assert jnp.allclose(out["normals"], ref_nrm, atol=1e-5, rtol=1e-5)

    # kernel 3 (tanh + replication-padded gradient) vs plain-JAX reference
    ref_grad = approx_psr_grad_ref(out["psr_grid"], R)        # (R, R, R, 3)
    got_grad = jnp.moveaxis(out["psr_grad"], 0, -1)           # channel-first -> last
    assert jnp.allclose(got_grad, ref_grad, atol=1e-4, rtol=1e-4)

    # kernel 2 (tiled lane-dense DPSR placeholder) vs small dense reference
    raw = dpsr_placeholder(inputs, R)
    raw_ref = _dpsr_dense_ref(ref_pts, ref_nrm, R)
    err = jnp.max(jnp.abs(raw - raw_ref))
    assert err <= 5e-3 * (1.0 + jnp.max(jnp.abs(raw_ref)))
    assert jnp.allclose(out["psr_grid"][0, 0], jnp.tanh(raw[0]),
                        atol=1e-4, rtol=1e-4)

    print("KERNEL_OK")
</pallas_src>

<mosaic_0001>
module attributes {stable_mosaic.version = 11 : i64} {
  func.func @_prep_kernel(%arg0: i32, %arg1: memref<6x256xf32, #tpu.memory_space<vmem>>, %arg2: memref<3x256xf32, #tpu.memory_space<vmem>>, %arg3: memref<3x256xf32, #tpu.memory_space<vmem>>) attributes {dimension_semantics = [#tpu.dimension_semantics<parallel>], iteration_bounds = array<i64: 1>, scalar_prefetch = 0 : i64, scratch_operands = 0 : i64, tpu.core_type = #tpu.core_type<tc>, window_params = [{transform_indices = @transform_0, window_bounds = array<i64: 6, 256>}, {transform_indices = @transform_1, window_bounds = array<i64: 3, 256>}, {transform_indices = @transform_2, window_bounds = array<i64: 3, 256>}]} {
    %c0 = arith.constant 0 : index
    %c0_0 = arith.constant 0 : index
    %0 = vector.load %arg1[%c0, %c0_0] : memref<6x256xf32, #tpu.memory_space<vmem>>, vector<6x256xf32>
    %1 = vector.extract_strided_slice %0 {offsets = [0, 0], sizes = [3, 256], strides = [1, 1]} : vector<6x256xf32> to vector<3x256xf32>
    %2 = vector.extract_strided_slice %0 {offsets = [3, 0], sizes = [3, 256], strides = [1, 1]} : vector<6x256xf32> to vector<3x256xf32>
    %3 = arith.negf %1 : vector<3x256xf32>
    %4 = math.exp %3 : vector<3x256xf32>
    %cst = arith.constant 1.000000e+00 : f32
    %5 = vector.broadcast %cst : f32 to vector<3x256xf32>
    %6 = arith.addf %5, %4 : vector<3x256xf32>
    %7 = arith.divf %5, %6 : vector<3x256xf32>
    %c0_1 = arith.constant 0 : index
    %c0_2 = arith.constant 0 : index
    %8 = vector.load %arg2[%c0_1, %c0_2] : memref<3x256xf32, #tpu.memory_space<vmem>>, vector<3x256xf32>
    tpu.vector_store %arg2[%c0_1, %c0_2], %7 {strides = array<i32>} : memref<3x256xf32, #tpu.memory_space<vmem>>, vector<3x256xf32>,
    %9 = arith.mulf %2, %2 : vector<3x256xf32>
    %cst_3 = arith.constant dense<0.000000e+00> : vector<256xf32>
    %10 = vector.multi_reduction <add>, %9, %cst_3 [0] : vector<3x256xf32> to vector<256xf32>
    %11 = vector.shape_cast %10 : vector<256xf32> to vector<1x256xf32>
    %12 = math.rsqrt %11 : vector<1x256xf32>
    %13 = vector.broadcast %12 : vector<1x256xf32> to vector<3x256xf32>
    %14 = arith.mulf %2, %13 : vector<3x256xf32>
    %c0_4 = arith.constant 0 : index
    %c0_5 = arith.constant 0 : index
    %15 = vector.load %arg3[%c0_4, %c0_5] : memref<3x256xf32, #tpu.memory_space<vmem>>, vector<3x256xf32>
    tpu.vector_store %arg3[%c0_4, %c0_5], %14 {strides = array<i32>} : memref<3x256xf32, #tpu.memory_space<vmem>>, vector<3x256xf32>,
    return
  }
  func.func @transform_0(%arg0: i32) -> (i32, i32) {
    %c0_i32 = arith.constant 0 : i32
    %c0_i32_0 = arith.constant 0 : i32
    return %c0_i32, %arg0 : i32, i32
  }
  func.func @transform_1(%arg0: i32) -> (i32, i32) {
    %c0_i32 = arith.constant 0 : i32
    %c0_i32_0 = arith.constant 0 : i32
    return %c0_i32, %arg0 : i32, i32
  }
  func.func @transform_2(%arg0: i32) -> (i32, i32) {
    %c0_i32 = arith.constant 0 : i32
    %c0_i32_0 = arith.constant 0 : i32
    return %c0_i32, %arg0 : i32, i32
  }
}

</mosaic_0001>

<bundles_post_ra>
// kernel: tpu_custom_call.1
= control target key start
LH: loop header
LB: loop body
LE: loop exit
PB: predicated region body
PF: predicated region fallthrough
CT: control target
= control target key end

     0   :  { %8 = vsyncpa [#allocation3], 0  ;;  %s317_s0 = inlined_call_operand.hbm [shape: f32[6,256], index: 0, kind: input, shape index: {}]   ;;  %s318_s1 = inlined_call_operand.hbm [shape: f32[3,256], index: 1, kind: output, shape index: {0}]   ;;  %s319_s2 = inlined_call_operand.hbm [shape: f32[3,256], index: 2, kind: output, shape index: {1}]  }
   0x1   :  { %9 = vsyncpa [#allocation4], 0 }
   0x2   :  { %10 = vsyncpa [#allocation7], 0  ;;  %s16_s11 = sshll.u32 %s317_s0, 4  ;;  %s263_s12 = smov [#allocation2]   ;;  %s17_s11 = int_to_ptr.hbm [resolvable:$true] %s16_s11 }
   0x3   :  { %s18_s13 = sshll.u32 %s263_s12, 4  ;;  %s19_s13 = int_to_ptr.vmem [resolvable:$true] %s18_s13 }
   0x4   :  { %21 = dma.hbm_to_vmem [thread:$0]  %s17_s11, 256, %s19_s13, [#allocation3]  }
   0x5   :  { %257 = dma.done.wait [#allocation3], 256  }
   0x6   :  { %258 = vsyncadd [#allocation3], 4294967040  ;;  %v284_v0 = vld [vmem:[#allocation2] sm:$0x3f]  ;;  %v286_v1 = vld [vmem:[#allocation2 + $0x8] sm:$0x3f] }
   0x7   :  { %v166_v2 = vmul.f32 -1.442695, %v284_v0  ;;  %v167_v3 = vmul.f32 -1.442695, %v286_v1  ;;  %v73_v4 = vmul.f32 %v284_v0, %v284_v0  ;;  %v74_v5 = vmul.f32 %v286_v1, %v286_v1  ;;  %s264_s0 = smov [#allocation5]   ;;  %s140_s17 = sshll.u32 %s318_s1, 4  ;;  %s141_s17 = int_to_ptr.hbm [resolvable:$true] %s140_s17 }
   0x8   :  { %vm81_vm0 = vcmask 1042432   ;;  %s138_s14 = sshll.u32 %s264_s0, 4  ;;  %vm69_vm9 = vcmask 1043456   ;;  %s265_s1 = smov [#allocation6]   ;;  %s139_s14 = int_to_ptr.vmem [resolvable:$true] %s138_s14 }
   0x9   :  { %173 = vpow2.f32 %v166_v2  ;;  %v77_v6 = vrot.slane %v73_v4, 3  ;;  %v78_v7 = vrot.slane %v74_v5, 3  ;;  %s149_s18 = sshll.u32 %s265_s1, 4  ;;  %s151_s21 = sshll.u32 %s319_s2, 4  ;;  %s150_s18 = int_to_ptr.vmem [resolvable:$true] %s149_s18  ;;  %s152_s21 = int_to_ptr.hbm [resolvable:$true] %s151_s21 }
   0xa   :  { %175 = vpow2.f32 %v167_v3 }
   0xb   :  { %v82_v8 = vsel %vm81_vm0, %v77_v6, 0.0  ;;  %v89_v9 = vsel %vm81_vm0, %v78_v7, 0.0  ;;  %vm124_vm0 = vcmask 1040384  }
   0xc   :  { %v83_v10 = vrot.slane %v82_v8, 4  ;;  %v90_v11 = vrot.slane %v89_v9, 4 }
   0xe   :  { %v84_v12 = vadd.f32 %v83_v10, %v82_v8  ;;  %v91_v13 = vadd.f32 %v90_v11, %v89_v9 }
   0xf   :  { %v174_v14 = vpop.eup %173 }
  0x10   :  { %v176_v15 = vpop.eup %175  ;;  %v34_v16 = vadd.f32 1.0, %v174_v14  ;;  %v85_v17 = vrot.slane %v84_v12, 2  ;;  %v92_v18 = vrot.slane %v91_v13, 2 }
  0x11   :  { %v35_v19 = vadd.f32 1.0, %v176_v15 }
  0x12   :  { %177 = vrcp.f32 %v34_v16  ;;  %v86_v20 = vadd.f32 %v85_v17, %v84_v12  ;;  %v93_v21 = vadd.f32 %v92_v18, %v91_v13  ;;  %vm41_vm1 = vweird.f32 %v34_v16 }
  0x13   :  { %179 = vrcp.f32 %v35_v19  ;;  %v45_v29 = vand.u32 2147483647, %v34_v16  ;;  %v47_v30 = vand.u32 2147483648, %v34_v16  ;;  %v62_v33 = vand.u32 2147483648, %v35_v19 }
  0x14   :  { %v87_v22 = vrot.slane %v86_v20, 1  ;;  %v94_v23 = vrot.slane %v93_v21, 1  ;;  %vm56_vm3 = vweird.f32 %v35_v19  ;;  %v60_v35 = vand.u32 2147483647, %v35_v19 }
  0x15   :  { %v48_v40 = vor.u32 1.1754944e-38, %v47_v30  ;;  %v63_v42 = vor.u32 1.1754944e-38, %v62_v33  ;;  %vm46_vm7 = vcmp.eq.f32.partialorder %v45_v29, 8.507059e+37 }
  0x16   :  { %v88_v25 = vadd.f32 %v87_v22, %v86_v20  ;;  %v95_v26 = vadd.f32 %v94_v23, %v93_v21  ;;  %vm61_vm8 = vcmp.eq.f32.partialorder %v60_v35, 8.507059e+37 }
  0x18   :  { %v178_v24 = vpop.eup %177  ;;  %181 = vrsqrt.f32 %v88_v25  ;;  %vm102_vm10 = vweird.f32 %v88_v25  ;;  %vm112_vm12 = vweird.f32 %v95_v26 }
  0x19   :  { %v180_v27 = vpop.eup %179  ;;  %v37_v28 = vmul.f32 %v178_v24, %v34_v16  ;;  %vm42_vm2 = vweird.f32 %v178_v24  ;;  %183 = vrsqrt.f32 %v95_v26 }
  0x1a   :  { %v52_v31 = vmul.f32 %v180_v27, %v35_v19  ;;  %vm57_vm4 = vweird.f32 %v180_v27  ;;  %vm294_vm5 = vmor %vm41_vm1, %vm42_vm2  ;;  %vm125_vm1 = vcmask 1044484  }
  0x1b   :  { %v38_v32 = vsub.f32 1.0, %v37_v28  ;;  %vm298_vm6 = vmor %vm56_vm3, %vm57_vm4 }
  0x1c   :  { %v53_v34 = vsub.f32 1.0, %v52_v31  ;;  %vm126_vm2 = vmor %vm124_vm0, %vm125_vm1 }
  0x1d   :  { %v39_v36 = vmul.f32 %v178_v24, %v38_v32 }
  0x1e   :  { %v54_v38 = vmul.f32 %v180_v27, %v53_v34  ;;  %v182_v43 = vpop.eup %181 }
  0x1f   :  { %v40_v39 = vadd.f32 %v178_v24, %v39_v36  ;;  %v184_v45 = vpop.eup %183  ;;  %v97_v47 = vmul.f32 %v182_v43, %v88_v25  ;;  %vm103_vm11 = vweird.f32 %v182_v43 }
  0x20   :  { %v55_v44 = vadd.f32 %v180_v27, %v54_v38  ;;  %v107_v49 = vmul.f32 %v184_v45, %v95_v26  ;;  %vm113_vm13 = vweird.f32 %v184_v45  ;;  %vm104_vm14 = vmor %vm102_vm10, %vm103_vm11 }
  0x21   :  { %v44_v46 = vsel %vm294_vm5, %v178_v24, %v40_v39  ;;  %v98_v52 = vmul.f32 %v182_v43, %v97_v47  ;;  %vm114_vm15 = vmor %vm112_vm12, %vm113_vm13 }
  0x22   :  { %v59_v48 = vsel %vm298_vm6, %v180_v27, %v55_v44  ;;  %v49_v50 = vsel %vm46_vm7, %v48_v40, %v44_v46  ;;  %v108_v54 = vmul.f32 %v184_v45, %v107_v49 }
  0x23   :  { %v64_v51 = vsel %vm61_vm8, %v63_v42, %v59_v48  ;;  %v99_v55 = vmul.f32 0.5, %v98_v52 }
  0x24   :  { %v68_v53 = vrot.slane %v64_v51, 4  ;;  %v109_v57 = vmul.f32 0.5, %v108_v54 }
  0x25   :  { %v100_v58 = vsub.f32 1.5, %v99_v55 }
  0x26   :  { %v70_v56 = vsel %vm69_vm9, %v49_v50, %v68_v53  ;;  %v110_v59 = vsub.f32 1.5, %v109_v57 }
  0x27   :  { %72 = vst [vmem:[#allocation5] sm:$0x77] %v70_v56  ;;  %v101_v60 = vmul.f32 %v182_v43, %v100_v58 }
  0x28   :  { %143 = dma.vmem_to_hbm [thread:$0]  %s139_s14, 128, %s141_s17, [#allocation4]   ;;  %v111_v61 = vmul.f32 %v184_v45, %v110_v59 }
  0x29   :  { %v105_v62 = vsel %vm104_vm14, %v182_v43, %v101_v60 }
  0x2a   :  { %v115_v63 = vsel %vm114_vm15, %v184_v45, %v111_v61  ;;  %v116_v2 = vmul.f32 %v105_v62, %v284_v0 }
  0x2b   :  { %v117_v3 = vmul.f32 %v115_v63, %v286_v1 }
  0x2d   :  { %v120_v4 = vrot.slane %v117_v3, 4 }
  0x2f   :  { %v121_v5 = vsel %vm69_vm9, %v116_v2, %v120_v4  ;;  %v122_v6 = vsel %vm69_vm9, %v120_v4, %v116_v2 }
  0x30   :  { %v168_v7 = vrot.slane %v121_v5, 11  ;;  %v169_v8 = vrot.slane %v122_v6, 11 }
  0x32   :  { %v130_v0 = vsel %vm126_vm2, %v168_v7, %v169_v8 }
  0x33   :  { %132 = vst [vmem:[#allocation6] sm:$0x77] %v130_v0 }
  0x34   :  { %154 = dma.vmem_to_hbm [thread:$0]  %s150_s18, 128, %s152_s21, [#allocation7]  }
  0x35   :  { %259 = dma.done.wait [#allocation4], 128  }
  0x36   :  { %260 = vsyncadd [#allocation4], 4294967168 }
  0x37   :  { %261 = dma.done.wait [#allocation7], 128  }
  0x38   :  { %262 = vsyncadd [#allocation7], 4294967168 }
  0x39   :  { %163 = vsyncpa [#allocation3], 1 }
  0x3a   :  { %164 = vsyncpa [#allocation4], 1 }
  0x3b   :  { %165 = vsyncpa [#allocation7], 1 }

</bundles_post_ra>
